<compile_context>
chip_gen: v7x
topology: tpu7x:2x2x1
jax: 0.10.0
libtpu: 0.0.40
codegen_flags: <defaults>
</compile_context>

<pallas_src>
import functools

import jax
import jax.numpy as jnp
from jax import lax
from jax.experimental import pallas as pl
from jax.experimental.pallas import tpu as pltpu


def _rope_kernel(x_ref, cos_ref, o_ref, *, n_rep):
    """x_ref: (1, ts, L) interleaved channels; cos_ref: (ts, L // n_rep); o_ref: (1, ts, L)."""
    cos_pos = cos_ref[...]
    if n_rep > 1:
        # Broadcast the per-head cos pattern across the G heads folded into the
        # lane dim.  VMEM-local lane concat; avoids a G x larger table in HBM.
        cos_pos = jnp.concatenate([cos_pos] * n_rep, axis=-1)
    sin_pos = cos_pos  # reference uses pe[..., 1::2] for BOTH (bug preserved)

    x = x_ref[...].astype(cos_pos.dtype)          # (1, ts, L)
    lane = lax.broadcasted_iota(jnp.int32, x.shape, 2)
    is_even = (lane & 1) == 0

    nxt = jnp.roll(x, -1, axis=2)   # lane i -> x[i+1]  (wrap lane never selected)
    prv = jnp.roll(x, 1, axis=2)    # lane i -> x[i-1]  (wrap lane never selected)
    # rotate-pair operand: even lane 2k -> -x[2k+1]; odd lane 2k+1 -> x[2k]
    x2 = jnp.where(is_even, -nxt, prv)

    o_ref[...] = (x * cos_pos + x2 * sin_pos).astype(o_ref.dtype)


def _cos_table(seq_len, head_dim, dtype):
    # NOTE(review): in a real model, precompute this once at init (registered
    # buffer style) rather than per forward call; it is tiny (S x D).
    pos = jnp.arange(seq_len, dtype=jnp.float32)[:, None]                 # (S, 1)
    wk = jnp.power(
        10000.0, -2.0 * jnp.arange(head_dim // 2, dtype=jnp.float32) / head_dim
    )                                                                     # (D/2,)
    cos_half = jnp.cos(pos * wk)                                          # (S, D/2)
    return jnp.repeat(cos_half, 2, axis=-1).astype(dtype)                 # (S, D): c0,c0,c1,c1,...


def _pick_fold(seq_len, dim):
    """Largest f dividing seq_len with f*dim <= 512, to lane-densify dim < 128."""
    if dim >= 128:
        return 1
    best, f = 1, 1
    while f <= seq_len and f * dim <= 512:
        if seq_len % f == 0:
            best = f
        f += 1
    return best


def _rope_call(x, cos_tab, n_rep):
    """x: (B, R, L) interleaved channels; cos_tab: (R, L // n_rep)."""
    B, R, L = x.shape
    Lc = cos_tab.shape[-1]
    assert Lc * n_rep == L and cos_tab.shape[0] == R

    # ---- byte-based, dtype-aware seq tiling: ~4 MiB per x block (>=1 MiB
    # blocks reach ~85% of HBM roofline), rows rounded to sublane multiples.
    blk_budget = 4 * 1024 * 1024
    max_rows = max(8, blk_budget // max(1, L * x.dtype.itemsize))
    ts = R if R <= max_rows else max(8, (max_rows // 8) * 8)

    # Explicit scoped-VMEM limit sized to the double-buffered working set
    # (in + out x-blocks + cos block) with headroom; stays < v7x 64 MiB VMEM.
    live = 2 * (2 * ts * L * x.dtype.itemsize) + 2 * ts * Lc * cos_tab.dtype.itemsize
    vmem_limit = int(min(max(2 * live, 32 * 1024 * 1024), 48 * 1024 * 1024))

    # Batch is the innermost grid axis -> the cos block index (s, 0) does not
    # change across it, so the table is DMA'd once per seq tile and reused.
    grid = (pl.cdiv(R, ts), B)

    kernel = functools.partial(_rope_kernel, n_rep=n_rep)
    return pl.pallas_call(
        kernel,
        out_shape=jax.ShapeDtypeStruct((B, R, L), x.dtype),
        grid_spec=pltpu.PrefetchScalarGridSpec(
            num_scalar_prefetch=0,
            grid=grid,
            in_specs=[
                pl.BlockSpec((1, ts, L), lambda s, b: (b, s, 0)),
                pl.BlockSpec((ts, Lc), lambda s, b: (s, 0)),
            ],
            out_specs=pl.BlockSpec((1, ts, L), lambda s, b: (b, s, 0)),
        ),
        compiler_params=pltpu.CompilerParams(
            dimension_semantics=("parallel", "parallel"),
            vmem_limit_bytes=vmem_limit,
        ),
    )(x, cos_tab)


def rope(x, output_dim):
    """RoPE forward. x: (B, S, D) or (B, S, G, D); D must equal output_dim."""
    assert x.shape[-1] == output_dim, "embedding dim must equal output_dim"
    assert output_dim % 2 == 0, "RoPE requires an even embedding dim"
    # bf16 inputs compute natively in bf16 (v6e/v7x have bf16 VALU); f32 else.
    compute_dtype = jnp.bfloat16 if x.dtype == jnp.bfloat16 else jnp.float32

    if x.ndim == 3:
        B, S, D = x.shape
        cos_tab = _cos_table(S, D, compute_dtype)                 # (S, D)
        f = _pick_fold(S, D)
        if f > 1:
            # Fold f consecutive positions into lanes -> lane-dense stores.
            out = _rope_call(
                x.reshape(B, S // f, f * D),
                cos_tab.reshape(S // f, f * D),
                n_rep=1,
            )
            return out.reshape(B, S, D)
        return _rope_call(x, cos_tab, n_rep=1)

    elif x.ndim == 4:
        B, S, G, D = x.shape
        cos_tab = _cos_table(S, D, compute_dtype)                 # (S, D), NOT replicated over G
        out = _rope_call(x.reshape(B, S, G * D), cos_tab, n_rep=G)
        return out.reshape(B, S, G, D)

    raise ValueError("inputs must be 3-D or 4-D")


def rope_ref(x, output_dim):
    """Pure-JAX transcription of the PyTorch RoPE.forward (for verification)."""
    B, S = x.shape[0], x.shape[1]
    pos = jnp.arange(S, dtype=jnp.float32)[:, None]
    wk = jnp.power(
        10000.0, -2.0 * jnp.arange(output_dim // 2, dtype=jnp.float32) / output_dim
    )
    pe = pos * wk  # (S, D//2)
    pe = jnp.stack([jnp.sin(pe), jnp.cos(pe)], axis=-1).reshape(S, output_dim)
    pe = jnp.broadcast_to(pe[None], (B, S, output_dim))
    cos_pos = jnp.repeat(pe[..., 1::2], 2, axis=-1)
    sin_pos = jnp.repeat(pe[..., 1::2], 2, axis=-1)  # same as cos (bug preserved)
    if x.ndim == 4:
        cos_pos = cos_pos[..., None, :]
        sin_pos = sin_pos[..., None, :]
    x2 = jnp.stack([-x[..., 1::2], x[..., ::2]], axis=-1).reshape(x.shape)
    return x * cos_pos + x2 * sin_pos


if __name__ == "__main__":
    # RoPE has no learned parameters; only output_dim (must match emb dim).
    batch, seq, dim = 2, 8, 32
    output_dim = dim

    key = jax.random.PRNGKey(0)
    k3, k4 = jax.random.split(key)

    # 3-D path (seq positions folded into lanes since dim < 128)
    x3 = jax.random.normal(k3, (batch, seq, dim), dtype=jnp.float32)
    out3 = jax.block_until_ready(rope(x3, output_dim))
    ref3 = rope_ref(x3, output_dim)
    assert out3.shape == x3.shape and out3.dtype == x3.dtype
    assert jnp.allclose(out3, ref3, atol=1e-5, rtol=1e-5), "3-D mismatch vs reference"

    # 4-D path (groups folded into lanes; cos broadcast over groups in-kernel)
    groups = 3
    x4 = jax.random.normal(k4, (batch, seq, groups, dim), dtype=jnp.float32)
    out4 = jax.block_until_ready(rope(x4, output_dim))
    ref4 = rope_ref(x4, output_dim)
    assert out4.shape == x4.shape and out4.dtype == x4.dtype
    assert jnp.allclose(out4, ref4, atol=1e-5, rtol=1e-5), "4-D mismatch vs reference"

    print("KERNEL_OK")
</pallas_src>

<mosaic_0001>
module attributes {stable_mosaic.version = 11 : i64} {
  func.func @_rope_kernel(%arg0: i32, %arg1: i32, %arg2: memref<1x1x256xf32, #tpu.memory_space<vmem>>, %arg3: memref<1x256xf32, #tpu.memory_space<vmem>>, %arg4: memref<1x1x256xf32, #tpu.memory_space<vmem>>) attributes {dimension_semantics = [#tpu.dimension_semantics<parallel>, #tpu.dimension_semantics<parallel>], iteration_bounds = array<i64: 1, 2>, scalar_prefetch = 0 : i64, scratch_operands = 0 : i64, tpu.core_type = #tpu.core_type<tc>, window_params = [{transform_indices = @transform_0, window_bounds = array<i64: 1, 1, 256>}, {transform_indices = @transform_1, window_bounds = array<i64: 1, 256>}, {transform_indices = @transform_2, window_bounds = array<i64: 1, 1, 256>}]} {
    %c0 = arith.constant 0 : index
    %c0_0 = arith.constant 0 : index
    %0 = vector.load %arg3[%c0, %c0_0] : memref<1x256xf32, #tpu.memory_space<vmem>>, vector<1x256xf32>
    %c0_1 = arith.constant 0 : index
    %c0_2 = arith.constant 0 : index
    %c0_3 = arith.constant 0 : index
    %1 = vector.load %arg2[%c0_1, %c0_2, %c0_3] : memref<1x1x256xf32, #tpu.memory_space<vmem>>, vector<1x1x256xf32>
    %2 = tpu.iota {dimensions = array<i32: 2>} : vector<1x1x256xi32>
    %c1_i32 = arith.constant 1 : i32
    %3 = vector.broadcast %c1_i32 : i32 to vector<1x1x256xi32>
    %4 = arith.andi %2, %3 : vector<1x1x256xi32>
    %c0_i32 = arith.constant 0 : i32
    %5 = vector.broadcast %c0_i32 : i32 to vector<1x1x256xi32>
    %6 = arith.cmpi eq, %4, %5 : vector<1x1x256xi32>
    %7 = vector.extract_strided_slice %1 {offsets = [0, 0, 1], sizes = [1, 1, 255], strides = [1, 1, 1]} : vector<1x1x256xf32> to vector<1x1x255xf32>
    %8 = vector.extract_strided_slice %1 {offsets = [0, 0, 0], sizes = [1, 1, 1], strides = [1, 1, 1]} : vector<1x1x256xf32> to vector<1x1x1xf32>
    %9 = tpu.concatenate %7, %8 in 2 : vector<1x1x255xf32>, vector<1x1x1xf32> -> vector<1x1x256xf32>
    %10 = vector.extract_strided_slice %1 {offsets = [0, 0, 255], sizes = [1, 1, 1], strides = [1, 1, 1]} : vector<1x1x256xf32> to vector<1x1x1xf32>
    %11 = vector.extract_strided_slice %1 {offsets = [0, 0, 0], sizes = [1, 1, 255], strides = [1, 1, 1]} : vector<1x1x256xf32> to vector<1x1x255xf32>
    %12 = tpu.concatenate %10, %11 in 2 : vector<1x1x1xf32>, vector<1x1x255xf32> -> vector<1x1x256xf32>
    %cst = arith.constant 0.000000e+00 : f32
    %13 = vector.broadcast %cst : f32 to vector<1x1x256xf32>
    %14 = arith.subf %13, %9 : vector<1x1x256xf32>
    %15 = arith.select %6, %14, %12 : vector<1x1x256xi1>, vector<1x1x256xf32>
    %16 = vector.shape_cast %0 : vector<1x256xf32> to vector<1x1x256xf32>
    %17 = arith.mulf %1, %16 : vector<1x1x256xf32>
    %18 = vector.shape_cast %0 : vector<1x256xf32> to vector<1x1x256xf32>
    %19 = arith.mulf %15, %18 : vector<1x1x256xf32>
    %20 = arith.addf %17, %19 : vector<1x1x256xf32>
    %c0_4 = arith.constant 0 : index
    %c0_5 = arith.constant 0 : index
    %c0_6 = arith.constant 0 : index
    %21 = vector.load %arg4[%c0_4, %c0_5, %c0_6] : memref<1x1x256xf32, #tpu.memory_space<vmem>>, vector<1x1x256xf32>
    tpu.vector_store %arg4[%c0_4, %c0_5, %c0_6], %20 {strides = array<i32>} : memref<1x1x256xf32, #tpu.memory_space<vmem>>, vector<1x1x256xf32>,
    return
  }
  func.func @transform_0(%arg0: i32, %arg1: i32) -> (i32, i32, i32) {
    %c0_i32 = arith.constant 0 : i32
    %c0_i32_0 = arith.constant 0 : i32
    return %arg1, %arg0, %c0_i32 : i32, i32, i32
  }
  func.func @transform_1(%arg0: i32, %arg1: i32) -> (i32, i32) {
    %c0_i32 = arith.constant 0 : i32
    %c0_i32_0 = arith.constant 0 : i32
    return %arg0, %c0_i32 : i32, i32
  }
  func.func @transform_2(%arg0: i32, %arg1: i32) -> (i32, i32, i32) {
    %c0_i32 = arith.constant 0 : i32
    %c0_i32_0 = arith.constant 0 : i32
    return %arg1, %arg0, %c0_i32 : i32, i32, i32
  }
}

</mosaic_0001>

<bundles_post_ra>
// kernel: tpu_custom_call.1
= control target key start
LH: loop header
LB: loop body
LE: loop exit
PB: predicated region body
PF: predicated region fallthrough
CT: control target
= control target key end

     0   :  { %7 = vsyncpa [#allocation3], 0  ;;  %s787_s0 = inlined_call_operand.hbm [shape: f32[2,1,256], index: 0, kind: input, shape index: {}]   ;;  %s788_s1 = inlined_call_operand.vmem [shape: f32[1,256], index: 1, kind: input, shape index: {}]   ;;  %s789_s2 = inlined_call_operand.hbm [shape: f32[2,1,256], index: 2, kind: output, shape index: {}]  }
   0x1   :  { %9 = vsyncpa [#allocation3 + $0x1], 0 }
   0x2   :  { %10 = vsyncpa [#allocation4], 0 }
   0x3   :  { %12 = vsyncpa [#allocation4 + $0x1], 0  ;;  %s608_s9 = smov 0   ;;  %s610_s10 = smov 0  }
   0x4   :  { %s612_s11 = smov 0   ;;  %s614_s12 = smov 0  }
   0x5   :  { %s616_s13 = smov 0   ;;  %s618_s14 = smov 0  }
   0x6 LB: > { %s391_s15 = sadd.s32 4294967295, %s586_s14   ;;  %s392_s16 = sadd.s32 4294967294, %s586_s14   ;;  %s586_s14 = sphi %s618_s14, %s18_s14   ;;  %s582_s13 = sphi %s616_s13, %s805_s13   ;;  %s578_s12 = sphi %s614_s12, %s804_s12   ;;  %s574_s11 = sphi %s612_s11, %s803_s11   ;;  %s570_s10 = sphi %s610_s10, %s802_s10   ;;  %s566_s9 = sphi %s608_s9, %s801_s9  }
   0x7   : > { %s27_s17 = sadd.s32 1, %s582_s13  ;;  %s39_s18 = sadd.s32 1, %s574_s11 }
   0x8   : > { %p28_p0 = scmp.ge.s32.totalorder %s27_s17, 2  ;;  %p46_p1 = scmp.ne.s32.totalorder %s574_s11, %s570_s10 }
   0x9   : > { %p47_p2 = scmp.eq.s32.totalorder %s586_s14, 0  ;;  %p52_p3 = scmp.ne.s32.totalorder %s570_s10, %s566_s9 }
   0xa   : > { %s807_s17 = smov (%p28_p0, %s27_s17), 0  ;;  %p53_p5 = scmp.eq.s32.totalorder %s391_s15, 0 }
   0xb   : > { %p649_p4 = por %p47_p2, %p46_p1  ;;  %s34_s20 = ssub.s32 %s582_s13, %s807_s17 }
   0xc   : > { %p104_p6 = scmp.eq.s32.totalorder %s391_s15, 1  ;;  %p37_p7 = scmp.eq.s32.totalorder %s34_s20, 0 }
   0xd   : > { %p655_p8 = por %p53_p5, %p52_p3  ;;  %p110_p10 = scmp.eq.s32.totalorder %s392_s16, 1 }
   0xe   : > { %p659_p9 = por %p104_p6, %p46_p1  ;;  %p421_p13 = scmp.lt.s32.totalorder %s586_s14, 2 }
   0xf   : > { %s664_s23 = scalar_select %p37_p7, %s574_s11, %s39_s18  }
  0x10   : > { %s793_s22 = scalar_select %p659_p9, 1, 0 }
  0x11   : > { %p666_p11 = por %p110_p10, %p52_p3  ;;  %s137_s25 = sand.u32 1, %s574_s11  }
  0x12   : > { %s396_s26 = sshll.u32 %s137_s25, 1  ;;  %s407_s27 = sshll.u32 %s582_s13, 5 }
  0x13   : > { %s794_s24 = scalar_select %p666_p11, 1, 0 }
  0x14   : > { %s677_s30 = scalar_lea.hbm %s787_s0, %s407_s27  ;;  %s141_s3 = scalar_lea.vmem [#allocation2], %s396_s26 }
  0x15   : > { %s151_s4 = sshll.u32 %s141_s3, 4  ;;  %p683_p0 = pnand %p421_p13, %p649_p4  ;;  %s679_s4 = int_to_ptr.vmem [resolvable:$true] %s151_s4 }
  0x16   : > { %s138_s6 = scalar_lea.sflag [#allocation3], %s137_s25  ;;  %s474_s7 = scalar_lea.hbm %s677_s30, 32 }
  0x17   : > { %p475_p3 = scmp.ne.s32.totalorder %s677_s30, %s474_s7  ;;  %p476_p5 = pneg %p683_p0 }
  0x18   : > { %s479_s16 = scalar_lea.hbm %s787_s0, 64  ;;  %p480_p4 = scmp.lt.u32.totalorder %s677_s30, %s787_s0 }
  0x19   : > { %p477_p6 = pnand %p476_p5, %p475_p3  ;;  %p481_p10 = scmp.lt.u32.totalorder %s479_s16, %s474_s7 }
  0x1a   : > { %p483_p12 = scmp.lt.u32.totalorder %s474_s7, %s677_s30 }
  0x1b   : > { %p478_p7 = pneg %p477_p6  ;;  %p482_p13 = por %p481_p10, %p480_p4 }
  0x1d   : > { %p484_p1 = por %p483_p12, %p482_p13 }
  0x1f   : > { %p485_p2 = pnand %p484_p1, %p478_p7 }
  0x21   : > { %488 = shalt.err (!%p485_p2)
}
  0x22   : > { %s489_s20 = scalar_lea.vmem %s679_s4, 32  ;;  %s588_s25 = smov [#allocation2]  }
  0x23   : > { %p490_p3 = scmp.ne.s32.totalorder %s679_s4, %s489_s20  ;;  %s494_s26 = sshll.u32 %s588_s25, 4  ;;  %s495_s26 = int_to_ptr.vmem [resolvable:$false] %s494_s26 }
  0x24   : > { %s496_s27 = scalar_lea.vmem %s495_s26, 64  ;;  %p497_p9 = scmp.lt.s32.totalorder %s679_s4, %s495_s26 }
  0x25   : > { %p492_p6 = pnand %p490_p3, %p476_p5  ;;  %p498_p4 = scmp.lt.s32.totalorder %s496_s27, %s489_s20 }
  0x27   : > { %p493_p11 = pneg %p492_p6  ;;  %p499_p10 = por %p498_p4, %p497_p9 }
  0x29   : > { %p500_p12 = pnand %p499_p10, %p493_p11 }
  0x2b   : > { %503 = shalt.err (!%p500_p12)
}
  0x2c   : > { %416 = dma.hbm_to_vmem [thread:$0]  (!%p683_p0), %s677_s30, 32, %s679_s4, %s138_s6  }
  0x2d   : > { %p796_p1 = scmp.lt.s32.totalorder %s586_s14, 3  ;;  %p797_p2 = scmp.ge.s32.totalorder %s586_s14, 1 }
  0x2f   : > { %p157_p5 = pnand %p797_p2, %p796_p1 }
  0x30   : > { %s719_s28 = sand.u32 (!%p157_p5), 1, %s570_s10  }
  0x31   : > { %160 = sbr.rel (%p157_p5) target bundleno = 212 (0xd4), region = 28  ;;  %s400_s29 = sshll.u32 (!%p157_p5), %s719_s28, 1 }
  0x32   : > { %s163_s3 = scalar_lea.sflag (!%p157_p5), [#allocation3], %s719_s28  ;;  %s166_s5 = scalar_lea.vmem (!%p157_p5), [#allocation2], %s400_s29 }
  0x38   : > { %557 = dma.done.wait (%p655_p8), %s163_s3, 32  }
  0x39   : > { %559 = vsyncadd (%p655_p8), %s163_s3, 4294967264  ;;  %v197_v0 = vlaneseq  ;;  %v196_v4 = vld [vmem:[%s166_s5] sm:$0x3]  ;;  %s589_s30 = smov 1   ;;  %s590_s4 = smov 127   ;;  %vm217_vm0 = vcmask 1039360  }
  0x3a   : > { %v591_v9 = vmov 1966171168   ;;  %v195_v14 = vld [vmem:[%s788_s1] sm:$0x3]  ;;  %vm228_vm1 = vcmask 7168   ;;  %s408_s7 = sshll.u32 %s578_s12, 5 }
  0x3b   : > { %v206_v1 = vshrl.u32 %v197_v0, 7  ;;  %v198_v7 = vand.u32 127, %v197_v0  ;;  %v255_v10 = vunpack.c.l.s4 %v591_v9  ;;  %v237_v33 = vmul.f32 %v196_v4, %v195_v14  ;;  %s190_s8 = scalar_lea.vmem [#allocation5], %s400_s29  ;;  %s738_s19 = scalar_lea.hbm %s789_s2, %s408_s7 }
  0x3c   : > { %s292_s15 = sshll.u32 %s190_s8, 4  ;;  %vm272_vm4 = vcmp.lt.s32.totalorder %v197_v0, 256  ;;  %s276_s20 = scalar_lea.sflag [#allocation4], %s719_s28  ;;  %s740_s15 = int_to_ptr.vmem [resolvable:$true] %s292_s15 }
  0x3d   : > { %v211_v2 = vsub.s32 1, %v206_v1  ;;  %v207_v3 = vsub.s32 0, %v206_v1  ;;  %v199_v8 = vadd.s32 128, %v198_v7  ;;  %v200_v13 = vand.u32 1, %v198_v7  ;;  %s504_s25 = scalar_lea.vmem %s740_s15, 32  ;;  %p798_p9 = scmp.ne.s32.totalorder %s793_s22, 0 }
  0x3e   : > { %v256_v16 = vunpack.c.0.s8 %v255_v10  ;;  %p505_p8 = scmp.ne.s32.totalorder %s740_s15, %s504_s25  ;;  %s592_s12 = smov [#allocation5]  }
  0x3f   : > { %v212_v5 = vrot.slane %v196_v4, %v211_v2  ;;  %v208_v6 = vrot.slane %v196_v4, %v207_v3  ;;  %v201_v15 = vand.u32 1, %v199_v8  ;;  %v246_v17 = vrot.slane %v195_v14, %v211_v2  ;;  %s508_s26 = sshll.u32 %s592_s12, 4  ;;  %s509_s26 = int_to_ptr.vmem [resolvable:$false] %s508_s26 }
  0x40   : > { %vm202_vm2 = vcmp.eq.s32.totalorder %v200_v13, 0  ;;  %v242_v20 = vrot.slane %v195_v14, %v207_v3  ;;  %v259_v29 = vsub.s32 %v256_v16, %v206_v1  ;;  %p506_p11 = pnand %p505_p8, %p798_p9  ;;  %s510_s27 = scalar_lea.vmem %s509_s26, 64 }
  0x41   : > { %223 = vrot.lane.b32.xlu1 %v212_v5, %s589_s30  ;;  %213 = vrot.lane.b32.xlu0 %v208_v6, %s590_s4  ;;  %vm203_vm3 = vcmp.eq.s32.totalorder %v201_v15, 0  ;;  %p511_p7 = scmp.lt.s32.totalorder %s740_s15, %s509_s26  ;;  %p512_p13 = scmp.lt.s32.totalorder %s510_s27, %s504_s25 }
  0x42   : > { %p507_p0 = pneg %p506_p11 }
  0x43   : > { %p513_p3 = por %p512_p13, %p511_p7 }
  0x45   : > { %226 = vrot.lane.b32.xlu1 %v208_v6, %s589_s30  ;;  %215 = vrot.lane.b32.xlu0 %v212_v5, %s590_s4  ;;  %p514_p6 = pnand %p513_p3, %p507_p0 }
  0xb3   : > { %v224_v11 = vpop.permute.xlu1 %223  ;;  %v214_v12 = vpop.permute.xlu0 %213 }
  0xb7   : > { %v227_v18 = vpop.permute.xlu1 %226  ;;  %v216_v19 = vpop.permute.xlu0 %215 }
  0xb8   : > { %v218_v21 = vsel %vm217_vm0, %v214_v12, %v216_v19  ;;  %v222_v22 = vsel %vm217_vm0, %v216_v19, %v214_v12  ;;  %v229_v25 = vsel %vm228_vm1, %v227_v18, %v224_v11  ;;  %v232_v26 = vsel %vm228_vm1, %v224_v11, %v227_v18 }
  0xb9   : > { %v233_v23 = vsub.f32 0.0, %v218_v21  ;;  %v234_v24 = vsub.f32 0.0, %v222_v22 }
  0xbb   : > { %v235_v27 = vsel %vm202_vm2, %v233_v23, %v232_v26  ;;  %v236_v28 = vsel %vm203_vm3, %v234_v24, %v229_v25 }
  0xbc   : > { %v249_v30 = vmul.f32 %v242_v20, %v235_v27  ;;  %v250_v31 = vmul.f32 %v246_v17, %v236_v28 }
  0xbe   : > { %v253_v32 = vcombine.low %v249_v30, %v250_v31 }
  0xc0   : > { %v260_v34 = vrot.slane %v253_v32, %v259_v29 }
  0xc2   : > { %v267_v35 = vrot.slane %v260_v34, %v259_v29 }
  0xc4   : > { %v269_v36 = vadd.f32 %v267_v35, %v237_v33 }
  0xc6   : > { %274 = vst.msk [vmem:[%s190_s8] sm:$0x3] %vm272_vm4, %v269_v36 }
  0xc7   : > { %517 = shalt.err (!%p514_p6)
}
  0xc8   : > { %s518_s28 = scalar_lea.hbm %s738_s19, 32  ;;  %s522_s5 = scalar_lea.hbm %s789_s2, 64 }
  0xc9   : > { %p519_p4 = scmp.ne.s32.totalorder %s738_s19, %s518_s28  ;;  %p523_p1 = scmp.lt.u32.totalorder %s738_s19, %s789_s2 }
  0xca   : > { %p524_p2 = scmp.lt.u32.totalorder %s522_s5, %s518_s28  ;;  %p526_p8 = scmp.lt.u32.totalorder %s518_s28, %s738_s19 }
  0xcb   : > { %p520_p10 = pnand %p519_p4, %p798_p9 }
  0xcc   : > { %p525_p5 = por %p524_p2, %p523_p1 }
  0xcd   : > { %p521_p12 = pneg %p520_p10 }
  0xce   : > { %p527_p11 = por %p526_p8, %p525_p5 }
  0xd0   : > { %p528_p0 = pnand %p527_p11, %p521_p12 }
  0xd2   : > { %531 = shalt.err (!%p528_p0)
}
  0xd3   : > { %411 = dma.vmem_to_hbm [thread:$0]  (%p798_p9), %s740_s15, 32, %s738_s19, %s276_s20  }
  0xd4 PF: > { %s304_s21 = sand.u32 1, %s566_s9   ;;  %p799_p7 = scmp.ne.s32.totalorder %s794_s24, 0 }
  0xd5   : > { %p800_p13 = scmp.ge.s32.totalorder %s586_s14, 2  ;;  %s305_s6 = scalar_lea.sflag [#allocation4], %s304_s21 }
  0xd7   : > { %p418_p3 = pnand %p800_p13, %p799_p7 }
  0xd9   : > { %561 = dma.done.wait (!%p418_p3), %s305_s6, 32  }
  0xda   : > { %563 = vsyncadd (!%p418_p3), %s305_s6, 4294967264  ;;  %s18_s14 = sadd.s32 1, %s586_s14   ;;  %s801_s9 = smov %s570_s10 }
  0xdb   : > { %p15_p6 = scmp.ge.s32.totalorder %s18_s14, 4   ;;  %s802_s10 = smov %s574_s11 }
  0xdc   : > { %s803_s11 = smov %s664_s23  ;;  %s804_s12 = smov %s582_s13 }
  0xdd   : > { %s805_s13 = smov %s807_s17  ;;  %17 = sbr.rel (!%p15_p6) target bundleno = 6 (0x6), region = 76 }
  0xe4   :  { %310 = vsyncpa [#allocation3], 1 }
  0xe5   :  { %312 = vsyncpa [#allocation3 + $0x1], 1 }
  0xe6   :  { %313 = vsyncpa [#allocation4], 1 }
  0xe7   :  { %315 = vsyncpa [#allocation4 + $0x1], 1 }

</bundles_post_ra>
